<compile_context>
chip_gen: v5e
topology: v5e:2x2
jax: 0.10.0
libtpu: 0.0.40
codegen_flags: <defaults>
</compile_context>

<pallas_src>
import jax
import jax.numpy as jnp
from jax.experimental import pallas as pl
from jax.experimental.pallas import tpu as pltpu

# ----------------------------- problem sizes --------------------------------
B, C, H, W = 2, 4, 16, 16            # small NCHW input
D = C * H * W                        # flattened feature dim = 1024
NUM_CLASSES = 10                     # classifier output classes
ND = 2                               # number of detectors / interpret methods
DET_CLASSES = 2                      # each detector outputs 2 logits
OUT_COLS = NUM_CLASSES + ND          # real output columns (12)
FUSED_COLS = 16                      # minimal fused width (full-array BlockSpec)


# --------------------------- one-time param packing ---------------------------
def pack_params(wc, bc, wd, bd):
    """Pack classifier + detector params into one narrow fused weight/bias.

    Runs ONCE at model-init time (not in the per-call path).

    Column layout (width FUSED_COLS = 16):
        [ classifier (NC) | (w_class1 - w_class0) per detector (ND) | zero pad ]

    Because the detector heads are linear, softmax(det)[:, 0] = sigmoid(d0 - d1)
    only needs the logit difference d1 - d0 = x @ (w1 - w0) + (b1 - b0); folding
    that difference into the packed columns removes all unaligned lane slices
    from the kernel and halves the detector columns.
    """
    wc = wc.astype(jnp.float32)
    bc = bc.astype(jnp.float32)
    w0 = wd[:, 0::DET_CLASSES].astype(jnp.float32)     # (D, ND) class-0 weights
    w1 = wd[:, 1::DET_CLASSES].astype(jnp.float32)     # (D, ND) class-1 weights
    b0 = bd[:, 0::DET_CLASSES].astype(jnp.float32)
    b1 = bd[:, 1::DET_CLASSES].astype(jnp.float32)

    w_f = jnp.zeros((D, FUSED_COLS), jnp.float32)
    w_f = w_f.at[:, :NUM_CLASSES].set(wc)
    w_f = w_f.at[:, NUM_CLASSES:NUM_CLASSES + ND].set(w1 - w0)

    b_f = jnp.zeros((1, FUSED_COLS), jnp.float32)
    b_f = b_f.at[:, :NUM_CLASSES].set(bc)
    b_f = b_f.at[:, NUM_CLASSES:NUM_CLASSES + ND].set(b1 - b0)

    # bf16 weight halves the dominant DMA; bias stays f32 (added post-dot).
    return w_f.astype(jnp.bfloat16), b_f


# ------------------------------- Pallas kernel -------------------------------
def _fused_kernel(xf_ref, w_ref, b_ref, out_ref):
    """Fused classifier + detectors + softmax/combine kernel.

    xf_ref : (B, D)           f32  flattened input
    w_ref  : (D, FUSED_COLS)  bf16 fused weight [wc | (w1-w0) per det | 0 pad]
    b_ref  : (1, FUSED_COLS)  f32  fused bias, same column layout
    out_ref: (B, FUSED_COLS)  f32  [classifier logits | N_0..N_{ND-1} | pad]
    """
    # Cast only the MXU operand to bf16 (v5e has no bf16 VALU/EUP); one fused
    # matmul covers the classifier and every detector head.
    xf = xf_ref[...].astype(jnp.bfloat16)
    z = jnp.dot(xf, w_ref[...], preferred_element_type=jnp.float32) + b_ref[...]

    # max over classifier logits only (mask detector/pad columns with -inf).
    col = jax.lax.broadcasted_iota(jnp.int32, z.shape, 1)
    maxc = jnp.max(jnp.where(col < NUM_CLASSES, z, -jnp.inf),
                   axis=1, keepdims=True)                     # (B, 1)

    # Detector columns hold z = d1 - d0 directly (packed as w1-w0), so
    # p0 = softmax([d0, d1])[:, 0] = 1 / (1 + exp(d1 - d0)).
    # Clamp the exp argument (matches max-subtracted softmax in the limit) and
    # use an exact reciprocal for parity with the reference.
    e = jnp.exp(jnp.clip(z, -30.0, 30.0))
    p0 = 1.0 / (1.0 + e)                                       # (B, FUSED_COLS)
    n = ((1.0 / 3.0) - p0 + 1.0) * maxc                        # (is_adv + 1) * maxc

    # Single full-block store: select N columns in-register, no second store.
    is_det = jnp.logical_and(col >= NUM_CLASSES, col < NUM_CLASSES + ND)
    out_ref[...] = jnp.where(is_det, n, z)


# ------------------------------- wrapper --------------------------------------
@jax.jit
def detector_multi_interpreter_classifier(x_nchw, w_fused, b_fused):
    """x_nchw: (B, C, H, W) f32, pre-packed params -> (B, NUM_CLASSES + ND) f32."""
    b = x_nchw.shape[0]
    xf = x_nchw.reshape(b, -1).astype(jnp.float32)   # (B, D) row-major flatten

    # B=2: a single grid step; nothing to pipeline.
    # TODO(synk): for B >= 128, add a batch grid axis marked "parallel" with a
    # (tile_B, D) input block and keep the weight/bias index maps constant so
    # the fused weight stays VMEM-resident (size tile_B for 32 MiB scoped VMEM
    # on v7x; both TensorCores then split the batch).
    out = pl.pallas_call(
        _fused_kernel,
        out_shape=jax.ShapeDtypeStruct((b, FUSED_COLS), jnp.float32),
        grid=(1,),
        in_specs=[
            pl.BlockSpec((b, D), lambda i: (0, 0)),
            pl.BlockSpec((D, FUSED_COLS), lambda i: (0, 0)),
            pl.BlockSpec((1, FUSED_COLS), lambda i: (0, 0)),
        ],
        out_specs=pl.BlockSpec((b, FUSED_COLS), lambda i: (0, 0)),
        compiler_params=pltpu.CompilerParams(
            dimension_semantics=("arbitrary",)),
    )(xf, w_fused, b_fused)

    return out[:, :OUT_COLS]


# ------------------------------ pure-JAX reference ----------------------------
def _reference(x_nchw, wc, bc, wd, bd):
    xf = x_nchw.reshape(x_nchw.shape[0], -1)
    logits = xf @ wc + bc
    det = xf @ wd + bd
    maxc = jnp.max(logits, axis=1, keepdims=True)
    cols = [logits]
    for i in range(ND):
        di = det[:, DET_CLASSES * i:DET_CLASSES * (i + 1)]
        p = jax.nn.softmax(di, axis=1)
        is_adv = 1.0 / 3.0 - p[:, 0:1]
        cols.append((is_adv + 1.0) * maxc)
    return jnp.concatenate(cols, axis=1)


# ---------------------------------- main ---------------------------------------
if __name__ == "__main__":
    key = jax.random.PRNGKey(0)
    kx, kwc, kbc, kwd, kbd = jax.random.split(key, 5)

    # deterministic synthetic input and parameters
    x = jax.random.normal(kx, (B, C, H, W), dtype=jnp.float32)
    wc = jax.random.normal(kwc, (D, NUM_CLASSES), dtype=jnp.float32) * (1.0 / jnp.sqrt(D))
    bc = jax.random.normal(kbc, (1, NUM_CLASSES), dtype=jnp.float32) * 0.01
    wd = jax.random.normal(kwd, (D, ND * DET_CLASSES), dtype=jnp.float32) * (1.0 / jnp.sqrt(D))
    bd = jax.random.normal(kbd, (1, ND * DET_CLASSES), dtype=jnp.float32) * 0.01

    # One-time packing at "init" (out of the per-call path).
    w_fused, b_fused = pack_params(wc, bc, wd, bd)
    w_fused = jax.block_until_ready(w_fused)
    b_fused = jax.block_until_ready(b_fused)

    out = detector_multi_interpreter_classifier(x, w_fused, b_fused)
    out = jax.block_until_ready(out)

    ref = _reference(x, wc, bc, wd, bd)
    assert out.shape == (B, NUM_CLASSES + ND), out.shape
    # bf16 dot operands (f32 accumulation) vs. the f32 reference -> bf16-level tol.
    assert jnp.allclose(out, ref, rtol=3e-2, atol=3e-2), "mismatch vs reference"

    print("KERNEL_OK")
</pallas_src>

<mosaic_0001>
module attributes {stable_mosaic.version = 11 : i64} {
  func.func @_fused_kernel(%arg0: i32, %arg1: memref<2x1024xf32, #tpu.memory_space<vmem>>, %arg2: memref<1024x16xbf16, #tpu.memory_space<vmem>>, %arg3: memref<1x16xf32, #tpu.memory_space<vmem>>, %arg4: memref<2x16xf32, #tpu.memory_space<vmem>>) attributes {dimension_semantics = [#tpu.dimension_semantics<arbitrary>], iteration_bounds = array<i64: 1>, scalar_prefetch = 0 : i64, scratch_operands = 0 : i64, tpu.core_type = #tpu.core_type<tc>, window_params = [{pipeline_mode = #tpu.pipeline_mode<synchronous>, transform_indices = @transform_0, window_bounds = array<i64: 2, 1024>}, {pipeline_mode = #tpu.pipeline_mode<synchronous>, transform_indices = @transform_1, window_bounds = array<i64: 1024, 16>}, {pipeline_mode = #tpu.pipeline_mode<synchronous>, transform_indices = @transform_2, window_bounds = array<i64: 1, 16>}, {pipeline_mode = #tpu.pipeline_mode<synchronous>, transform_indices = @transform_3, window_bounds = array<i64: 2, 16>}]} {
    %c0 = arith.constant 0 : index
    %c0_0 = arith.constant 0 : index
    %0 = vector.load %arg1[%c0, %c0_0] : memref<2x1024xf32, #tpu.memory_space<vmem>>, vector<2x1024xf32>
    %1 = arith.truncf %0 : vector<2x1024xf32> to vector<2x1024xbf16>
    %c0_1 = arith.constant 0 : index
    %c0_2 = arith.constant 0 : index
    %2 = vector.load %arg2[%c0_1, %c0_2] : memref<1024x16xbf16, #tpu.memory_space<vmem>>, vector<1024x16xbf16>
    %cst = arith.constant dense<0.000000e+00> : vector<2x16xf32>
    %3 = tpu.matmul %1, %2, %cst {dimension_numbers = #tpu.dot_dimension_numbers<[1], [0], [0], [1], [0, 0, 1, 1], [], []>} : vector<2x1024xbf16>, vector<1024x16xbf16>, vector<2x16xf32> -> vector<2x16xf32>
    %c0_3 = arith.constant 0 : index
    %c0_4 = arith.constant 0 : index
    %4 = vector.load %arg3[%c0_3, %c0_4] : memref<1x16xf32, #tpu.memory_space<vmem>>, vector<1x16xf32>
    %5 = vector.broadcast %4 : vector<1x16xf32> to vector<2x16xf32>
    %6 = arith.addf %3, %5 : vector<2x16xf32>
    %7 = tpu.iota {dimensions = array<i32: 1>} : vector<2x16xi32>
    %c10_i32 = arith.constant 10 : i32
    %8 = vector.broadcast %c10_i32 : i32 to vector<2x16xi32>
    %9 = arith.cmpi slt, %7, %8 : vector<2x16xi32>
    %cst_5 = arith.constant 0xFF800000 : f32
    %10 = vector.broadcast %cst_5 : f32 to vector<2x16xf32>
    %11 = arith.select %9, %6, %10 : vector<2x16xi1>, vector<2x16xf32>
    %cst_6 = arith.constant dense<0xFF800000> : vector<2xf32>
    %12 = vector.multi_reduction <maximumf>, %11, %cst_6 [1] : vector<2x16xf32> to vector<2xf32>
    %13 = vector.shape_cast %12 : vector<2xf32> to vector<2x1xf32>
    %cst_7 = arith.constant -3.000000e+01 : f32
    %cst_8 = arith.constant 3.000000e+01 : f32
    %14 = vector.broadcast %cst_7 : f32 to vector<2x16xf32>
    %15 = arith.maximumf %14, %6 : vector<2x16xf32>
    %16 = vector.broadcast %cst_8 : f32 to vector<2x16xf32>
    %17 = arith.minimumf %16, %15 : vector<2x16xf32>
    %18 = math.exp %17 : vector<2x16xf32>
    %cst_9 = arith.constant 1.000000e+00 : f32
    %19 = vector.broadcast %cst_9 : f32 to vector<2x16xf32>
    %20 = arith.addf %19, %18 : vector<2x16xf32>
    %cst_10 = arith.constant 1.000000e+00 : f32
    %21 = vector.broadcast %cst_10 : f32 to vector<2x16xf32>
    %22 = arith.divf %21, %20 : vector<2x16xf32>
    %cst_11 = arith.constant 0.333333343 : f32
    %23 = vector.broadcast %cst_11 : f32 to vector<2x16xf32>
    %24 = arith.subf %23, %22 : vector<2x16xf32>
    %cst_12 = arith.constant 1.000000e+00 : f32
    %25 = vector.broadcast %cst_12 : f32 to vector<2x16xf32>
    %26 = arith.addf %24, %25 : vector<2x16xf32>
    %27 = vector.broadcast %13 : vector<2x1xf32> to vector<2x16xf32>
    %28 = arith.mulf %26, %27 : vector<2x16xf32>
    %c10_i32_13 = arith.constant 10 : i32
    %29 = vector.broadcast %c10_i32_13 : i32 to vector<2x16xi32>
    %30 = arith.cmpi sge, %7, %29 : vector<2x16xi32>
    %c12_i32 = arith.constant 12 : i32
    %31 = vector.broadcast %c12_i32 : i32 to vector<2x16xi32>
    %32 = arith.cmpi slt, %7, %31 : vector<2x16xi32>
    %33 = arith.andi %30, %32 : vector<2x16xi1>
    %34 = arith.select %33, %28, %6 : vector<2x16xi1>, vector<2x16xf32>
    %c0_14 = arith.constant 0 : index
    %c0_15 = arith.constant 0 : index
    %35 = vector.load %arg4[%c0_14, %c0_15] : memref<2x16xf32, #tpu.memory_space<vmem>>, vector<2x16xf32>
    tpu.vector_store %arg4[%c0_14, %c0_15], %34 {strides = array<i32>} : memref<2x16xf32, #tpu.memory_space<vmem>>, vector<2x16xf32>,
    return
  }
  func.func @transform_0(%arg0: i32) -> (i32, i32) {
    %c0_i32 = arith.constant 0 : i32
    %c0_i32_0 = arith.constant 0 : i32
    %c0_i32_1 = arith.constant 0 : i32
    return %c0_i32, %c0_i32_0 : i32, i32
  }
  func.func @transform_1(%arg0: i32) -> (i32, i32) {
    %c0_i32 = arith.constant 0 : i32
    %c0_i32_0 = arith.constant 0 : i32
    %c0_i32_1 = arith.constant 0 : i32
    return %c0_i32, %c0_i32_0 : i32, i32
  }
  func.func @transform_2(%arg0: i32) -> (i32, i32) {
    %c0_i32 = arith.constant 0 : i32
    %c0_i32_0 = arith.constant 0 : i32
    %c0_i32_1 = arith.constant 0 : i32
    return %c0_i32, %c0_i32_0 : i32, i32
  }
  func.func @transform_3(%arg0: i32) -> (i32, i32) {
    %c0_i32 = arith.constant 0 : i32
    %c0_i32_0 = arith.constant 0 : i32
    %c0_i32_1 = arith.constant 0 : i32
    return %c0_i32, %c0_i32_0 : i32, i32
  }
}

</mosaic_0001>

<bundles_post_ra>
// kernel: detector_multi_interpreter_classifier.1
= control target key start
LH: loop header
LB: loop body
LE: loop exit
PB: predicated region body
PF: predicated region fallthrough
CT: control target
= control target key end

     0   :  { %s1298_s0 = inlined_call_operand.vmem [shape: f32[2,1024], index: 0, kind: input, shape index: {}]   ;;  %s1299_s1 = inlined_call_operand.vmem [shape: bf16[1024,16], index: 1, kind: input, shape index: {}]   ;;  %s1300_s2 = inlined_call_operand.vmem [shape: f32[1,16], index: 2, kind: input, shape index: {}]   ;;  %s1301_s3 = inlined_call_operand.hbm [shape: f32[2,16], index: 3, kind: output, shape index: {}]  }
   0x1   :  { %v982_v0 = vld [vmem:[%s1299_s1 + $0x38] sm:$0xff]  ;;  %v981_v4 = vld [vmem:[%s1299_s1 + $0x30] sm:$0xff]  ;;  %v980_v8 = vld [vmem:[%s1299_s1 + $0x28] sm:$0xff] }
   0x2   :  { %v990_v1 = vld [vmem:[%s1299_s1 + $0x78] sm:$0xff]  ;;  %562 = vmatpush.bf16.msra.mxu0 %v982_v0  ;;  %v989_v5 = vld [vmem:[%s1299_s1 + $0x70] sm:$0xff]  ;;  %v988_v9 = vld [vmem:[%s1299_s1 + $0x68] sm:$0xff] }
   0x3   :  { %v998_v2 = vld [vmem:[%s1299_s1 + $0xb8] sm:$0xff]  ;;  %575 = vmatpush.bf16.msra.mxu1 %v990_v1  ;;  %v997_v6 = vld [vmem:[%s1299_s1 + $0xb0] sm:$0xff]  ;;  %v996_v10 = vld [vmem:[%s1299_s1 + $0xa8] sm:$0xff] }
   0x4   :  { %v1006_v3 = vld [vmem:[%s1299_s1 + $0xf8] sm:$0xff]  ;;  %588 = vmatpush.bf16.msra.mxu2 %v998_v2  ;;  %v1005_v7 = vld [vmem:[%s1299_s1 + $0xf0] sm:$0xff]  ;;  %v1004_v11 = vld [vmem:[%s1299_s1 + $0xe8] sm:$0xff] }
   0x5   :  { %601 = vmatpush.bf16.msra.mxu3 %v1006_v3  ;;  %v979_v12 = vld [vmem:[%s1299_s1 + $0x20] sm:$0xff]  ;;  %v978_v17 = vld [vmem:[%s1299_s1 + $0x18] sm:$0xff]  ;;  %v977_v21 = vld [vmem:[%s1299_s1 + $0x10] sm:$0xff] }
   0x6   :  { %563 = vmatpush.bf16.msra.mxu0 %v981_v4  ;;  %v987_v13 = vld [vmem:[%s1299_s1 + $0x60] sm:$0xff]  ;;  %v986_v18 = vld [vmem:[%s1299_s1 + $0x58] sm:$0xff]  ;;  %v985_v22 = vld [vmem:[%s1299_s1 + $0x50] sm:$0xff] }
   0x7   :  { %576 = vmatpush.bf16.msra.mxu1 %v989_v5  ;;  %v995_v14 = vld [vmem:[%s1299_s1 + $0xa0] sm:$0xff]  ;;  %v994_v19 = vld [vmem:[%s1299_s1 + $0x98] sm:$0xff] }
   0x8   :  { %589 = vmatpush.bf16.msra.mxu2 %v997_v6  ;;  %v1003_v15 = vld [vmem:[%s1299_s1 + $0xe0] sm:$0xff]  ;;  %v1002_v20 = vld [vmem:[%s1299_s1 + $0xd8] sm:$0xff] }
   0x9   :  { %602 = vmatpush.bf16.msra.mxu3 %v1005_v7  ;;  %v15_v16 = vld [vmem:[%s1298_s0] sm:$0xff] }
   0xa   :  { %564 = vmatpush.bf16.msra.mxu0 %v980_v8  ;;  %19 = vst [vmem:[#allocation1] ss:$4 sm:$0xff] %v15_v16 }
   0xb   :  { %577 = vmatpush.bf16.msra.mxu1 %v988_v9 }
   0xc   :  { %590 = vmatpush.bf16.msra.mxu2 %v996_v10 }
   0xd   :  { %603 = vmatpush.bf16.msra.mxu3 %v1004_v11 }
   0xe   :  { %565 = vmatpush.bf16.msra.mxu0 %v979_v12 }
   0xf   :  { %578 = vmatpush.bf16.msra.mxu1 %v987_v13 }
  0x10   :  { %591 = vmatpush.bf16.msra.mxu2 %v995_v14 }
  0x11   :  { %604 = vmatpush.bf16.msra.mxu3 %v1003_v15 }
  0x12   :  { %566 = vmatpush.bf16.msra.mxu0 %v978_v17 }
  0x13   :  { %579 = vmatpush.bf16.msra.mxu1 %v986_v18 }
  0x14   :  { %8 = vsyncpa [#allocation3], 0  ;;  %592 = vmatpush.bf16.msra.mxu2 %v994_v19  ;;  %v993_v23 = vld [vmem:[%s1299_s1 + $0x90] sm:$0xff]  ;;  %v976_v25 = vld [vmem:[%s1299_s1 + $0x8] sm:$0xff]  ;;  %vm670_vm1 = vcmask 123904   ;;  %s709_s10 = sshll.u32 %s1301_s3, 4  ;;  %s710_s10 = int_to_ptr.hbm [resolvable:$true] %s709_s10 }
  0x15   :  { %605 = vmatpush.bf16.msra.mxu3 %v1002_v20  ;;  %v1001_v24 = vld [vmem:[%s1299_s1 + $0xd0] sm:$0xff]  ;;  %v984_v26 = vld [vmem:[%s1299_s1 + $0x48] sm:$0xff]  ;;  %v975_v30 = vld [vmem:[%s1299_s1] sm:$0xff] }
  0x16   :  { %567 = vmatpush.bf16.msra.mxu0 %v977_v21  ;;  %v992_v27 = vld [vmem:[%s1299_s1 + $0x88] sm:$0xff]  ;;  %v983_v31 = vld [vmem:[%s1299_s1 + $0x40] sm:$0xff]  ;;  %v1014_v34 = vld [vmem:[%s1299_s1 + $0x138] sm:$0xff] }
  0x17   :  { %580 = vmatpush.bf16.msra.mxu1 %v985_v22  ;;  %v1000_v28 = vld [vmem:[%s1299_s1 + $0xc8] sm:$0xff]  ;;  %v991_v32 = vld [vmem:[%s1299_s1 + $0x80] sm:$0xff]  ;;  %v1022_v35 = vld [vmem:[%s1299_s1 + $0x178] sm:$0xff] }
  0x18   :  { %593 = vmatpush.bf16.msra.mxu2 %v993_v23  ;;  %v16_v29 = vld [vmem:[%s1298_s0 + $0x8] sm:$0xff]  ;;  %v999_v33 = vld [vmem:[%s1299_s1 + $0xc0] sm:$0xff]  ;;  %v24_v36 = vld.sshfl [vmem:[#allocation1 + $0x10] sm:$0xff pattern:$0x73625140] }
  0x19   :  { %606 = vmatpush.bf16.msra.mxu3 %v1001_v24  ;;  %21 = vst [vmem:[#allocation1 + $0x20] ss:$4 sm:$0xff] %v16_v29  ;;  %v22_v37 = vld.sshfl [vmem:[#allocation1] sm:$0xff pattern:$0x73625140]  ;;  %v1030_v40 = vld [vmem:[%s1299_s1 + $0x1b8] sm:$0xff]  ;;  %v40_v42 = vpack.c.bf16 %v24_v36, %v24_v36 }
  0x1a   :  { %568 = vmatpush.bf16.msra.mxu0 %v976_v25  ;;  %v25_v38 = vld.sshfl [vmem:[#allocation1 + $0x18] sm:$0xff pattern:$0x73625140]  ;;  %v23_v39 = vld.sshfl [vmem:[#allocation1 + $0x8] sm:$0xff pattern:$0x73625140]  ;;  %v38_v43 = vpack.c.bf16 %v22_v37, %v22_v37 }
  0x1b   :  { %581 = vmatpush.bf16.msra.mxu1 %v984_v26  ;;  %v1038_v41 = vld [vmem:[%s1299_s1 + $0x1f8] sm:$0xff]  ;;  %v41_v44 = vpack.c.bf16 %v25_v38, %v25_v38  ;;  %v39_v45 = vpack.c.bf16 %v23_v39, %v23_v39  ;;  %v1013_v46 = vld [vmem:[%s1299_s1 + $0x130] sm:$0xff]  ;;  %v1012_v50 = vld [vmem:[%s1299_s1 + $0x128] sm:$0xff] }
  0x1c   :  { %594 = vmatpush.bf16.msra.mxu2 %v992_v27  ;;  %v1021_v47 = vld [vmem:[%s1299_s1 + $0x170] sm:$0xff]  ;;  %v1020_v51 = vld [vmem:[%s1299_s1 + $0x168] sm:$0xff]  ;;  %v1011_v54 = vld [vmem:[%s1299_s1 + $0x120] sm:$0xff] }
  0x1d   :  { %607 = vmatpush.bf16.msra.mxu3 %v1000_v28  ;;  %v1029_v48 = vld [vmem:[%s1299_s1 + $0x1b0] sm:$0xff]  ;;  %v1028_v52 = vld [vmem:[%s1299_s1 + $0x1a8] sm:$0xff]  ;;  %v1019_v55 = vld [vmem:[%s1299_s1 + $0x160] sm:$0xff] }
  0x1e   :  { %569 = vmatpush.bf16.msra.mxu0 %v975_v30  ;;  %v1037_v49 = vld [vmem:[%s1299_s1 + $0x1f0] sm:$0xff]  ;;  %v1036_v53 = vld [vmem:[%s1299_s1 + $0x1e8] sm:$0xff]  ;;  %v1027_v56 = vld [vmem:[%s1299_s1 + $0x1a0] sm:$0xff] }
  0x1f   :  { %582 = vmatpush.bf16.msra.mxu1 %v983_v31  ;;  %v1035_v57 = vld [vmem:[%s1299_s1 + $0x1e0] sm:$0xff]  ;;  %v1010_v58 = vld [vmem:[%s1299_s1 + $0x118] sm:$0xff]  ;;  %v1009_v62 = vld [vmem:[%s1299_s1 + $0x110] sm:$0xff] }
  0x20   :  { %595 = vmatpush.bf16.msra.mxu2 %v991_v32  ;;  %v1018_v59 = vld [vmem:[%s1299_s1 + $0x158] sm:$0xff]  ;;  %v1017_v63 = vld [vmem:[%s1299_s1 + $0x150] sm:$0xff]  ;;  %v1008_v2 = vld [vmem:[%s1299_s1 + $0x108] sm:$0xff] }
  0x21   :  { %608 = vmatpush.bf16.msra.mxu3 %v999_v33  ;;  %570 = vmatmul.bf16.vlgmr.msra.gmra.mxu0 %v38_v43  ;;  %v1026_v60 = vld [vmem:[%s1299_s1 + $0x198] sm:$0xff]  ;;  %v1025_v0 = vld [vmem:[%s1299_s1 + $0x190] sm:$0xff]  ;;  %v1016_v3 = vld [vmem:[%s1299_s1 + $0x148] sm:$0xff]  ;;  %v666_v33 = vlaneseq }
  0x22   :  { %614 = vmatpush.bf16.msrb.mxu0 %v1014_v34  ;;  %583 = vmatmul.bf16.vlgmr.msra.gmra.mxu1 %v39_v45  ;;  %v1034_v61 = vld [vmem:[%s1299_s1 + $0x1d8] sm:$0xff]  ;;  %v1033_v1 = vld [vmem:[%s1299_s1 + $0x1d0] sm:$0xff]  ;;  %v1024_v4 = vld [vmem:[%s1299_s1 + $0x188] sm:$0xff] }
  0x23   :  { %627 = vmatpush.bf16.msrb.mxu1 %v1022_v35  ;;  %596 = vmatmul.bf16.vlgmr.msra.gmra.mxu2 %v40_v42  ;;  %v1032_v5 = vld [vmem:[%s1299_s1 + $0x1c8] sm:$0xff]  ;;  %v1007_v6 = vld [vmem:[%s1299_s1 + $0x100] sm:$0xff]  ;;  %v28_v12 = vld.sshfl [vmem:[#allocation1 + $0x30] sm:$0xff pattern:$0x73625140]  ;;  %v667_v35 = vand.u32 127, %v666_v33 }
  0x24   :  { %640 = vmatpush.bf16.msrb.mxu2 %v1030_v40  ;;  %609 = vmatmul.bf16.vlgmr.msra.gmra.mxu3 %v41_v44  ;;  %v1015_v7 = vld [vmem:[%s1299_s1 + $0x140] sm:$0xff]  ;;  %v27_v11 = vld.sshfl [vmem:[#allocation1 + $0x28] sm:$0xff pattern:$0x73625140]  ;;  %v44_v16 = vpack.c.bf16 %v28_v12, %v28_v12 }
  0x25   :  { %653 = vmatpush.bf16.msrb.mxu3 %v1038_v41  ;;  %v1023_v8 = vld [vmem:[%s1299_s1 + $0x180] sm:$0xff]  ;;  %v29_v13 = vld.sshfl [vmem:[#allocation1 + $0x38] sm:$0xff pattern:$0x73625140]  ;;  %v43_v15 = vpack.c.bf16 %v27_v11, %v27_v11  ;;  %vm668_vm0 = vcmp.lt.s32.totalorder %v667_v35, 10  ;;  %vm697_vm6 = vcmp.ge.s32.totalorder %v667_v35, 10 }
  0x26   :  { %615 = vmatpush.bf16.msrb.mxu0 %v1013_v46  ;;  %v1031_v9 = vld [vmem:[%s1299_s1 + $0x1c0] sm:$0xff]  ;;  %v45_v17 = vpack.c.bf16 %v29_v13, %v29_v13  ;;  %vm698_vm7 = vcmp.lt.s32.totalorder %v667_v35, 12 }
  0x27   :  { %628 = vmatpush.bf16.msrb.mxu1 %v1021_v47  ;;  %v26_v10 = vld.sshfl [vmem:[#allocation1 + $0x20] sm:$0xff pattern:$0x73625140]  ;;  %vm699_vm8 = vmand %vm697_vm6, %vm698_vm7 }
  0x28   :  { %641 = vmatpush.bf16.msrb.mxu2 %v1029_v48  ;;  %v42_v14 = vpack.c.bf16 %v26_v10, %v26_v10  ;;  %v1040_v24 = vld [vmem:[%s1300_s2] ss:$0 sm:$0xff]  ;;  %s1071_s2 = smov [#allocation2]  }
  0x29   :  { %654 = vmatpush.bf16.msrb.mxu3 %v1037_v49  ;;  %s707_s7 = sshll.u32 %s1071_s2, 4  ;;  %s708_s7 = int_to_ptr.vmem [resolvable:$true] %s707_s7 }
  0x2a   :  { %616 = vmatpush.bf16.msrb.mxu0 %v1012_v50 }
  0x2b   :  { %629 = vmatpush.bf16.msrb.mxu1 %v1020_v51 }
  0x2c   :  { %642 = vmatpush.bf16.msrb.mxu2 %v1028_v52 }
  0x2d   :  { %655 = vmatpush.bf16.msrb.mxu3 %v1036_v53 }
  0x2e   :  { %617 = vmatpush.bf16.msrb.mxu0 %v1011_v54 }
  0x2f   :  { %630 = vmatpush.bf16.msrb.mxu1 %v1019_v55 }
  0x30   :  { %643 = vmatpush.bf16.msrb.mxu2 %v1027_v56 }
  0x31   :  { %656 = vmatpush.bf16.msrb.mxu3 %v1035_v57 }
  0x32   :  { %618 = vmatpush.bf16.msrb.mxu0 %v1010_v58 }
  0x33   :  { %631 = vmatpush.bf16.msrb.mxu1 %v1018_v59 }
  0x34   :  { %644 = vmatpush.bf16.msrb.mxu2 %v1026_v60 }
  0x35   :  { %657 = vmatpush.bf16.msrb.mxu3 %v1034_v61 }
  0x36   :  { %619 = vmatpush.bf16.msrb.mxu0 %v1009_v62 }
  0x37   :  { %632 = vmatpush.bf16.msrb.mxu1 %v1017_v63 }
  0x38   :  { %645 = vmatpush.bf16.msrb.mxu2 %v1025_v0 }
  0x39   :  { %658 = vmatpush.bf16.msrb.mxu3 %v1033_v1 }
  0x3a   :  { %620 = vmatpush.bf16.msrb.mxu0 %v1008_v2 }
  0x3b   :  { %633 = vmatpush.bf16.msrb.mxu1 %v1016_v3 }
  0x3c   :  { %646 = vmatpush.bf16.msrb.mxu2 %v1024_v4 }
  0x3d   :  { %659 = vmatpush.bf16.msrb.mxu3 %v1032_v5 }
  0x3e   :  { %621 = vmatpush.bf16.msrb.mxu0 %v1007_v6 }
  0x3f   :  { %634 = vmatpush.bf16.msrb.mxu1 %v1015_v7 }
  0x40   :  { %647 = vmatpush.bf16.msrb.mxu2 %v1023_v8 }
  0x41   :  { %660 = vmatpush.bf16.msrb.mxu3 %v1031_v9  ;;  %622 = vmatmul.bf16.vlgmr.msrb.gmra.mxu0 %v42_v14 }
  0x42   :  { %635 = vmatmul.bf16.vlgmr.msrb.gmra.mxu1 %v43_v15 }
  0x43   :  { %648 = vmatmul.bf16.vlgmr.msrb.gmra.mxu2 %v44_v16 }
  0x44   :  { %661 = vmatmul.bf16.vlgmr.msrb.gmra.mxu3 %v45_v17 }
  0x9e   :  { %v571_v18 = vpop.f32.mrf.mxu0 }
  0x9f   :  { %v584_v19 = vpop.f32.mrf.mxu1  ;;  %v572_v27 = vadd.f32 %v1040_v24, %v571_v18 }
  0xa1   :  { %v585_v28 = vadd.f32 %v584_v19, %v572_v27 }
  0xa6   :  { %v597_v20 = vpop.f32.mrf.mxu2  ;;  %v573_v22 = vpop.f32.mrf.mxu0 }
  0xa7   :  { %v610_v21 = vpop.f32.mrf.mxu3  ;;  %v586_v23 = vpop.f32.mrf.mxu1  ;;  %v598_v29 = vadd.f32 %v597_v20, %v585_v28 }
  0xa9   :  { %v611_v30 = vadd.f32 %v610_v21, %v598_v29 }
  0xae   :  { %v599_v25 = vpop.f32.mrf.mxu2 }
  0xaf   :  { %v612_v26 = vpop.f32.mrf.mxu3 }
  0xbe   :  { %v623_v31 = vpop.f32.mrf.mxu0 }
  0xbf   :  { %v636_v32 = vpop.f32.mrf.mxu1  ;;  %v624_v34 = vadd.f32 %v623_v31, %v611_v30 }
  0xc1   :  { %v637_v36 = vadd.f32 %v636_v32, %v624_v34 }
  0xc6   :  { %v649_v37 = vpop.f32.mrf.mxu2  ;;  %v625_v40 = vpop.f32.mrf.mxu0 }
  0xc7   :  { %v662_v38 = vpop.f32.mrf.mxu3  ;;  %v650_v39 = vadd.f32 %v649_v37, %v637_v36  ;;  %v638_v41 = vpop.f32.mrf.mxu1 }
  0xc9   :  { %v663_v42 = vadd.f32 %v662_v38, %v650_v39 }
  0xcb   :  { %v669_v43 = vsel %vm668_vm0, %v663_v42, -inf  ;;  %v974_v47 = vclamps-f32 %v663_v42, 30.0 }
  0xcc   :  { %v671_v44 = vsel %vm670_vm1, %v669_v43, -inf }
  0xcd   :  { %672 = vmax.xlane.f32.xlu0 %v671_v44  ;;  %v676_v48 = vmul.f32 1.442695, %v974_v47 }
  0xce   :  { %v651_v45 = vpop.f32.mrf.mxu2 }
  0xcf   :  { %v664_v46 = vpop.f32.mrf.mxu3  ;;  %1041 = vpow2.f32 %v676_v48 }
  0xd5   :  { %v1042_v49 = vpop.eup %1041 }
  0xd6   :  { %v678_v50 = vadd.f32 1.0, %v1042_v49 }
  0xd8   :  { %1043 = vrcp.f32 %v678_v50  ;;  %v690_v56 = vand.u32 2147483648, %v678_v50  ;;  %vm684_vm3 = vweird.f32 %v678_v50  ;;  %v688_v57 = vand.u32 2147483647, %v678_v50 }
  0xda   :  { %v691_v59 = vor.u32 1.1754944e-38, %v690_v56  ;;  %vm689_vm5 = vcmp.eq.f32.partialorder %v688_v57, 8.507059e+37 }
  0xde   :  { %v1044_v51 = vpop.eup %1043 }
  0xdf   :  { %v680_v52 = vmul.f32 %v1044_v51, %v678_v50  ;;  %vm685_vm2 = vweird.f32 %v1044_v51 }
  0xe0   :  { %vm686_vm4 = vmor %vm684_vm3, %vm685_vm2 }
  0xe1   :  { %v681_v53 = vsub.f32 1.0, %v680_v52 }
  0xe3   :  { %v682_v54 = vmul.f32 %v1044_v51, %v681_v53 }
  0xe5   :  { %v683_v55 = vadd.f32 %v1044_v51, %v682_v54 }
  0xe7   :  { %v687_v58 = vsel %vm686_vm4, %v1044_v51, %v683_v55 }
  0xe8   :  { %v692_v60 = vsel %vm689_vm5, %v691_v59, %v687_v58 }
  0xe9   :  { %v694_v61 = vsub.f32 0.33333334, %v692_v60 }
  0xeb   :  { %v695_v62 = vadd.f32 1.0, %v694_v61 }
 0x140   :  { %v673_v63 = vpop.xlane.xlu0 %672 }
 0x141   :  { %v696_v0 = vmul.f32 %v695_v62, %v673_v63 }
 0x143   :  { %v700_v1 = vsel %vm699_vm8, %v696_v0, %v663_v42 }
 0x144   :  { %701 = vst.msk [vmem:[#allocation2] sm:$0x3] %vm670_vm1, %v700_v1 }
 0x145   :  { %712 = dma.vmem_to_hbm [thread:$0]  %s708_s7, 32, %s710_s10, [#allocation3]  }
 0x146   :  { %1069 = dma.done.wait [#allocation3], 32  }
 0x147   :  { %1070 = vsyncadd [#allocation3], 4294967264 }
 0x148   :  { %717 = vsyncpa [#allocation3], 1 }

</bundles_post_ra>
